<compile_context>
chip_gen: v7x
topology: tpu7x:2x2x1
jax: 0.10.0
libtpu: 0.0.40
codegen_flags: <defaults>
</compile_context>

<pallas_src>
import functools

import jax
import jax.numpy as jnp
from jax.experimental import pallas as pl
from jax.experimental.pallas import tpu as pltpu


_SUPPORTED_ACTIVATIONS = ("sigmoid", "relu", "tanh", "leaky_relu", "elu")

# Flips to False at runtime if the lane-dense index store fails to lower; the
# column-layout kernels (known-good from v2) are used instead.
_LANE_DENSE = True


# ---------------------------------------------------------------------------
# Generation-aware budgets / compiler params
# ---------------------------------------------------------------------------
@functools.lru_cache(maxsize=None)
def _gen_info():
    """VMEM / core budgets keyed off the attached TPU generation."""
    try:
        kind = jax.devices()[0].device_kind.lower()
    except Exception:  # no device yet / unusual platform
        kind = ""
    if "v7" in kind or "7x" in kind:
        # v7x: 64 MiB physical VMEM per TensorCore, 2 TensorCores per chip.
        return {"vmem_limit": 48 << 20, "tile_budget": 12 << 20, "multi_core": True}
    if any(g in kind for g in ("v4", "v5", "v6")):
        # 128 MiB physical VMEM; scoped default is only 16-32 MiB -> raise it.
        return {"vmem_limit": 64 << 20, "tile_budget": 24 << 20, "multi_core": False}
    # Unknown chip: stay inside a conservative 16 MiB scoped default.
    return {"vmem_limit": None, "tile_budget": 3 << 20, "multi_core": False}


def _compiler_params(num_tiles):
    info = _gen_info()
    if info["multi_core"] and num_tiles >= 2 and hasattr(pltpu, "CORE_PARALLEL"):
        # Only CORE_PARALLEL actually splits the grid across v7x's 2 TensorCores;
        # "parallel" vs "arbitrary" is a codegen no-op.
        sem = (pltpu.CORE_PARALLEL,)
    else:
        sem = (pltpu.PARALLEL,)
    kwargs = dict(dimension_semantics=sem)
    if info["vmem_limit"] is not None:
        kwargs["vmem_limit_bytes"] = info["vmem_limit"]
    return pltpu.CompilerParams(**kwargs)


def _batch_tile(b, row_bytes, multiple=32, max_rows=32768):
    """Rows per grid step.

    `row_bytes` estimates the VMEM footprint of ONE batch row including the
    double-buffered input+output tiles and f32 working copies.  Tiles are sized
    against the generation-aware budget (0.5-4+ MiB tiles are needed to approach
    HBM roofline; per-step overhead ~0.35 us) and rounded to a multiple of 32 so
    bf16/int8 inputs never force a sublane repack.
    """
    budget = _gen_info()["tile_budget"]
    t = min(max_rows, max(multiple, budget // max(row_bytes, 1)))
    if t >= b:
        return b
    return max(multiple, (t // multiple) * multiple)


def _round_tile(tb, b):
    """Generic tile sanitation: full batch, or a multiple of 8."""
    if tb >= b:
        return b
    return max(8, (tb // 8) * 8)


def _lane_tile(tb, b):
    """Lane-dense index out-spec needs tile_b == b (single tile) or tile_b % 128 == 0."""
    if tb >= b:
        return b
    tb = max(128, (tb // 128) * 128)
    return b if tb >= b else tb


# ---------------------------------------------------------------------------
# Activation kernel (self.act_func)
# ---------------------------------------------------------------------------
def _apply_activation(x, activation):
    if activation == "relu":
        return jnp.maximum(x, 0.0)
    elif activation == "sigmoid":
        # EUP exp/recip path, keeps VALU slots free.
        return jax.nn.sigmoid(x)
    elif activation == "tanh":
        return jnp.tanh(x)
    elif activation == "leaky_relu":
        # torch.nn.LeakyReLU default negative_slope = 0.01
        return jnp.where(x >= 0.0, x, 0.01 * x)
    elif activation == "elu":
        # torch.nn.ELU default alpha = 1.0
        return jnp.where(x >= 0.0, x, jnp.expm1(x))
    raise NotImplementedError(
        "Activation Function Not Implemented. Needs to be one of: "
        "[sigmoid, relu, tanh, leaky_relu, elu]")


def _act_kernel(x_ref, o_ref, *, activation):
    o_ref[...] = _apply_activation(x_ref[...], activation)


def activation_fwd(x, activation="relu", tile_b=None):
    b, f = x.shape
    # per-row VMEM: double-buffered in + out tiles, plus activation working copy
    row_bytes = 4 * f * x.dtype.itemsize + 4 * f
    tb = tile_b if tile_b is not None else _batch_tile(b, row_bytes)
    tb = _round_tile(min(tb, b), b)
    nt = pl.cdiv(b, tb)
    return pl.pallas_call(
        functools.partial(_act_kernel, activation=activation),
        out_shape=jax.ShapeDtypeStruct((b, f), x.dtype),
        grid=(nt,),
        in_specs=[pl.BlockSpec((tb, f), lambda i: (i, 0))],
        out_specs=pl.BlockSpec((tb, f), lambda i: (i, 0)),
        compiler_params=_compiler_params(nt),
    )(x)


# ---------------------------------------------------------------------------
# Softmax kernel over axis=1  (predict_proba)
# ---------------------------------------------------------------------------
def _softmax_kernel(f_ref, p_ref):
    f = f_ref[...].astype(jnp.float32)
    m = jnp.max(f, axis=1, keepdims=True)
    e = jnp.exp(f - m)
    # Exact divide: the kernel is HBM-bound, so the precise reciprocal is free
    # and probability rows sum to 1 at f32 precision.
    p_ref[...] = (e / jnp.sum(e, axis=1, keepdims=True)).astype(p_ref.dtype)


def predict_proba_from_logits(f, tile_b=None):
    b, c = f.shape
    row_bytes = 4 * c * f.dtype.itemsize + 8 * c   # double-buffered in/out + f32 f,e
    tb = tile_b if tile_b is not None else _batch_tile(b, row_bytes)
    tb = _round_tile(min(tb, b), b)
    nt = pl.cdiv(b, tb)
    return pl.pallas_call(
        _softmax_kernel,
        out_shape=jax.ShapeDtypeStruct((b, c), f.dtype),
        grid=(nt,),
        in_specs=[pl.BlockSpec((tb, c), lambda i: (i, 0))],
        out_specs=pl.BlockSpec((tb, c), lambda i: (i, 0)),
        compiler_params=_compiler_params(nt),
    )(f)


# ---------------------------------------------------------------------------
# Argmax kernel over axis=1  (predict)
# ---------------------------------------------------------------------------
def _argmax_rows(f):
    """(tb, 1) int32 first-index argmax over axis=1 of an f32 tile."""
    c = f.shape[1]
    m = jnp.max(f, axis=1, keepdims=True)                      # XLU row max
    ids = jax.lax.broadcasted_iota(jnp.int32, f.shape, 1)
    cand = jnp.where(f == m, ids, jnp.int32(c))                 # np.argmax tie-break
    return jnp.min(cand, axis=1, keepdims=True)                 # XLU row min


def _argmax_lane_kernel(f_ref, idx_ref):
    idx_col = _argmax_rows(f_ref[...].astype(jnp.float32))      # (tb, 1)
    # Relayout to (1, tb) on the otherwise-idle XLU so the index store is one
    # lane-dense unmasked vst instead of tb lane-width-1 masked vst.msk stores.
    idx_ref[...] = jnp.transpose(idx_col)                       # (1, tb)


def _argmax_col_kernel(f_ref, idx_ref):
    idx_ref[...] = _argmax_rows(f_ref[...].astype(jnp.float32))  # (tb, 1) fallback


def _argmax_row_bytes(f):
    c = f.shape[1]
    return 2 * c * f.dtype.itemsize + 8 * c + 16


def _predict_lane(f, tile_b):
    b, c = f.shape
    tb = tile_b if tile_b is not None else _batch_tile(b, _argmax_row_bytes(f), multiple=128)
    tb = _lane_tile(tb, b)
    nt = pl.cdiv(b, tb)
    out = pl.pallas_call(
        _argmax_lane_kernel,
        out_shape=jax.ShapeDtypeStruct((1, nt * tb), jnp.int32),
        grid=(nt,),
        in_specs=[pl.BlockSpec((tb, c), lambda i: (i, 0))],
        out_specs=pl.BlockSpec((1, tb), lambda i: (0, i)),
        compiler_params=_compiler_params(nt),
    )(f)
    return out[0, :b]


def _predict_col(f, tile_b):
    b, c = f.shape
    tb = tile_b if tile_b is not None else _batch_tile(b, _argmax_row_bytes(f))
    tb = _round_tile(min(tb, b), b)
    nt = pl.cdiv(b, tb)
    out = pl.pallas_call(
        _argmax_col_kernel,
        out_shape=jax.ShapeDtypeStruct((b, 1), jnp.int32),
        grid=(nt,),
        in_specs=[pl.BlockSpec((tb, c), lambda i: (i, 0))],
        out_specs=pl.BlockSpec((tb, 1), lambda i: (i, 0)),
        compiler_params=_compiler_params(nt),
    )(f)
    return out[:, 0]


def predict_from_logits(f, tile_b=None):
    global _LANE_DENSE
    if _LANE_DENSE:
        try:
            return _predict_lane(f, tile_b)
        except Exception:
            _LANE_DENSE = False   # relayout didn't lower: use column layout from now on
    return _predict_col(f, tile_b)


# ---------------------------------------------------------------------------
# Fused softmax + argmax (one HBM read of the logits when both are needed)
# ---------------------------------------------------------------------------
def _softmax_argmax_lane_kernel(f_ref, p_ref, idx_ref):
    f = f_ref[...].astype(jnp.float32)
    c = f.shape[1]
    m = jnp.max(f, axis=1, keepdims=True)                       # shared row max
    e = jnp.exp(f - m)
    p_ref[...] = (e / jnp.sum(e, axis=1, keepdims=True)).astype(p_ref.dtype)
    ids = jax.lax.broadcasted_iota(jnp.int32, f.shape, 1)
    cand = jnp.where(f == m, ids, jnp.int32(c))
    idx_ref[...] = jnp.transpose(jnp.min(cand, axis=1, keepdims=True))  # (1, tb)


def _softmax_argmax_col_kernel(f_ref, p_ref, idx_ref):
    f = f_ref[...].astype(jnp.float32)
    c = f.shape[1]
    m = jnp.max(f, axis=1, keepdims=True)
    e = jnp.exp(f - m)
    p_ref[...] = (e / jnp.sum(e, axis=1, keepdims=True)).astype(p_ref.dtype)
    ids = jax.lax.broadcasted_iota(jnp.int32, f.shape, 1)
    cand = jnp.where(f == m, ids, jnp.int32(c))
    idx_ref[...] = jnp.min(cand, axis=1, keepdims=True)


def _fused_row_bytes(f):
    c = f.shape[1]
    return 4 * c * f.dtype.itemsize + 12 * c + 16


def _predict_with_proba_lane(f, tile_b):
    b, c = f.shape
    tb = tile_b if tile_b is not None else _batch_tile(b, _fused_row_bytes(f), multiple=128)
    tb = _lane_tile(tb, b)
    nt = pl.cdiv(b, tb)
    proba, idx = pl.pallas_call(
        _softmax_argmax_lane_kernel,
        out_shape=(jax.ShapeDtypeStruct((b, c), f.dtype),
                   jax.ShapeDtypeStruct((1, nt * tb), jnp.int32)),
        grid=(nt,),
        in_specs=[pl.BlockSpec((tb, c), lambda i: (i, 0))],
        out_specs=(pl.BlockSpec((tb, c), lambda i: (i, 0)),
                   pl.BlockSpec((1, tb), lambda i: (0, i))),
        compiler_params=_compiler_params(nt),
    )(f)
    return idx[0, :b], proba


def _predict_with_proba_col(f, tile_b):
    b, c = f.shape
    tb = tile_b if tile_b is not None else _batch_tile(b, _fused_row_bytes(f))
    tb = _round_tile(min(tb, b), b)
    nt = pl.cdiv(b, tb)
    proba, idx = pl.pallas_call(
        _softmax_argmax_col_kernel,
        out_shape=(jax.ShapeDtypeStruct((b, c), f.dtype),
                   jax.ShapeDtypeStruct((b, 1), jnp.int32)),
        grid=(nt,),
        in_specs=[pl.BlockSpec((tb, c), lambda i: (i, 0))],
        out_specs=(pl.BlockSpec((tb, c), lambda i: (i, 0)),
                   pl.BlockSpec((tb, 1), lambda i: (i, 0))),
        compiler_params=_compiler_params(nt),
    )(f)
    return idx[:, 0], proba


def predict_with_proba_from_logits(f, tile_b=None):
    global _LANE_DENSE
    if _LANE_DENSE:
        try:
            return _predict_with_proba_lane(f, tile_b)
        except Exception:
            _LANE_DENSE = False
    return _predict_with_proba_col(f, tile_b)


# ---------------------------------------------------------------------------
# Thin Python wrapper mirroring BaseNetwork
# ---------------------------------------------------------------------------
class BaseNetworkPallas:
    def __init__(self, n_neurons=50, activation="relu", input_dim=1, output_dim=1):
        if activation not in _SUPPORTED_ACTIVATIONS:
            raise NotImplementedError(
                "Activation Function Not Implemented. Needs to be one of: "
                "[sigmoid, relu, tanh, leaky_relu, elu]")
        self.activation = activation
        self.n_neurons = n_neurons
        self.input_dim = input_dim
        self.output_dim = output_dim

    def act_func(self, x):
        return activation_fwd(x, self.activation)

    def forward(self, x):
        raise NotImplementedError  # abstract, implemented by subclasses

    def inference_forward(self, x, **kwargs):
        raise NotImplementedError  # abstract, implemented by subclasses

    # predict / predict_proba post-processing, operating on logits `f`
    # (in the original, f = self.inference_forward(x) from a subclass).
    # Note: indices are int32 (torch.argmax would give int64).
    def predict(self, f):
        return predict_from_logits(f)

    def predict_proba(self, f):
        return predict_proba_from_logits(f)

    # fused variant: one HBM pass over the logits when both are wanted
    def predict_with_proba(self, f):
        return predict_with_proba_from_logits(f)


if __name__ == "__main__":
    key = jax.random.PRNGKey(0)
    k1, k2, k3, k4 = jax.random.split(key, 4)

    batch, n_neurons, output_dim = 8, 32, 16
    net = BaseNetworkPallas(n_neurons=n_neurons, activation="relu",
                            input_dim=n_neurons, output_dim=output_dim)

    # pre-activation hidden features and logits (stand-ins for subclass outputs)
    h = jax.random.normal(k1, (batch, n_neurons), dtype=jnp.float32)
    logits = jax.random.normal(k2, (batch, output_dim), dtype=jnp.float32)

    # 1) activation kernel
    act_out = jax.block_until_ready(net.act_func(h))
    assert jnp.allclose(act_out, jnp.maximum(h, 0.0), atol=1e-6)
    sig_out = jax.block_until_ready(activation_fwd(h, "sigmoid"))
    assert jnp.allclose(sig_out, jax.nn.sigmoid(h), atol=1e-5)
    tanh_out = jax.block_until_ready(activation_fwd(h, "tanh"))
    assert jnp.allclose(tanh_out, jnp.tanh(h), atol=1e-5)
    elu_out = jax.block_until_ready(activation_fwd(h, "elu"))
    assert jnp.allclose(elu_out, jnp.where(h >= 0, h, jnp.expm1(h)), atol=1e-5)

    # 2) softmax kernel (predict_proba) -- exact divide now
    proba = jax.block_until_ready(net.predict_proba(logits))
    assert jnp.allclose(proba, jax.nn.softmax(logits, axis=1), atol=1e-5)
    assert jnp.allclose(jnp.sum(proba, axis=1), 1.0, atol=1e-5)

    # 3) argmax kernel (predict)
    y_pred = jax.block_until_ready(net.predict(logits))
    assert jnp.array_equal(y_pred, jnp.argmax(logits, axis=1).astype(jnp.int32))

    # 4) fused softmax + argmax
    y_pred2, proba2 = net.predict_with_proba(logits)
    jax.block_until_ready((y_pred2, proba2))
    assert jnp.array_equal(y_pred2, y_pred)
    assert jnp.allclose(proba2, proba, atol=1e-6)

    # 5) exercise the tiled (multi-block) grid path, including a ragged last tile
    bb = 200
    big_h = jax.random.normal(k3, (bb, n_neurons), dtype=jnp.float32)
    tiled = jax.block_until_ready(activation_fwd(big_h, "leaky_relu", tile_b=64))
    assert jnp.allclose(tiled, jnp.where(big_h >= 0, big_h, 0.01 * big_h), atol=1e-6)

    big_logits = jax.random.normal(k4, (bb, output_dim), dtype=jnp.float32)
    y_big, p_big = predict_with_proba_from_logits(big_logits, tile_b=128)
    jax.block_until_ready((y_big, p_big))
    assert jnp.array_equal(y_big, jnp.argmax(big_logits, axis=1).astype(jnp.int32))
    assert jnp.allclose(p_big, jax.nn.softmax(big_logits, axis=1), atol=1e-5)

    p_big2 = jax.block_until_ready(predict_proba_from_logits(big_logits, tile_b=64))
    assert jnp.allclose(p_big2, jax.nn.softmax(big_logits, axis=1), atol=1e-5)
    y_big2 = jax.block_until_ready(predict_from_logits(big_logits, tile_b=128))
    assert jnp.array_equal(y_big2, y_big)

    print("KERNEL_OK")
</pallas_src>

<mosaic_0001>
module attributes {stable_mosaic.version = 11 : i64} {
  func.func @_act_kernel(%arg0: i32, %arg1: memref<8x32xf32, #tpu.memory_space<vmem>>, %arg2: memref<8x32xf32, #tpu.memory_space<vmem>>) attributes {dimension_semantics = [#tpu.dimension_semantics<parallel>], iteration_bounds = array<i64: 1>, scalar_prefetch = 0 : i64, scratch_operands = 0 : i64, tpu.core_type = #tpu.core_type<tc>, window_params = [{transform_indices = @transform_0, window_bounds = array<i64: 8, 32>}, {transform_indices = @transform_1, window_bounds = array<i64: 8, 32>}]} {
    %c0 = arith.constant 0 : index
    %c0_0 = arith.constant 0 : index
    %0 = vector.load %arg1[%c0, %c0_0] : memref<8x32xf32, #tpu.memory_space<vmem>>, vector<8x32xf32>
    %cst = arith.constant 0.000000e+00 : f32
    %1 = vector.broadcast %cst : f32 to vector<8x32xf32>
    %2 = arith.maximumf %0, %1 : vector<8x32xf32>
    %c0_1 = arith.constant 0 : index
    %c0_2 = arith.constant 0 : index
    %3 = vector.load %arg2[%c0_1, %c0_2] : memref<8x32xf32, #tpu.memory_space<vmem>>, vector<8x32xf32>
    tpu.vector_store %arg2[%c0_1, %c0_2], %2 {strides = array<i32>} : memref<8x32xf32, #tpu.memory_space<vmem>>, vector<8x32xf32>,
    return
  }
  func.func @transform_0(%arg0: i32) -> (i32, i32) {
    %c0_i32 = arith.constant 0 : i32
    %c0_i32_0 = arith.constant 0 : i32
    return %arg0, %c0_i32 : i32, i32
  }
  func.func @transform_1(%arg0: i32) -> (i32, i32) {
    %c0_i32 = arith.constant 0 : i32
    %c0_i32_0 = arith.constant 0 : i32
    return %arg0, %c0_i32 : i32, i32
  }
}

</mosaic_0001>

<bundles_post_ra>
// kernel: tpu_custom_call.1
= control target key start
LH: loop header
LB: loop body
LE: loop exit
PB: predicated region body
PF: predicated region fallthrough
CT: control target
= control target key end

     0   :  { %6 = vsyncpa [#allocation3], 0  ;;  %s126_s0 = inlined_call_operand.hbm [shape: f32[8,32], index: 0, kind: input, shape index: {}]   ;;  %s127_s1 = inlined_call_operand.hbm [shape: f32[8,32], index: 1, kind: output, shape index: {}]  }
   0x1   :  { %7 = vsyncpa [#allocation4], 0  ;;  %s90_s6 = smov [#allocation2]   ;;  %s42_s10 = scalar_lea.hbm %s126_s0, 128 }
   0x2   :  { %s14_s7 = sshll.u32 %s90_s6, 4  ;;  %p43_p0 = scmp.ne.s32.totalorder %s126_s0, %s42_s10  ;;  %s15_s7 = int_to_ptr.vmem [resolvable:$true] %s14_s7 }
   0x3   :  { %p46_p1 = scmp.lt.u32.totalorder %s42_s10, %s126_s0 }
   0x5   :  { %p48_p2 = pnand %p46_p1, %p43_p0 }
   0x7   :  { %51 = shalt.err (!%p48_p2)
}
   0x8   :  { %s52_s15 = scalar_lea.vmem %s15_s7, 128  ;;  %p57_p4 = scmp.lt.s32.totalorder %s15_s7, %s15_s7 }
   0x9   :  { %p53_p3 = scmp.ne.s32.totalorder %s15_s7, %s52_s15  ;;  %p58_p5 = scmp.lt.s32.totalorder %s52_s15, %s52_s15 }
   0xb   :  { %p59_p6 = por %p58_p5, %p57_p4 }
   0xd   :  { %p60_p7 = pnand %p59_p6, %p53_p3 }
   0xf   :  { %63 = shalt.err (!%p60_p7)
}
  0x10   :  { %17 = dma.hbm_to_vmem [thread:$0]  %s126_s0, 128, %s15_s7, [#allocation3]  }
  0x11   :  { %86 = dma.done.wait [#allocation3], 128  }
  0x12   :  { %87 = vsyncadd [#allocation3], 4294967168  ;;  %s91_s18 = smov [#allocation5]   ;;  %v21_v0 = vld [vmem:[#allocation2] sm:$0xff]  ;;  %vm23_vm0 = vcmask 261120  }
  0x13   :  { %s31_s19 = sshll.u32 %s91_s18, 4  ;;  %v22_v1 = vmax.f32 %v21_v0, 0.0  ;;  %s32_s19 = int_to_ptr.vmem [resolvable:$true] %s31_s19 }
  0x14   :  { %s64_s20 = scalar_lea.vmem %s32_s19, 128  ;;  %p69_p9 = scmp.lt.s32.totalorder %s32_s19, %s32_s19 }
  0x15   :  { %24 = vst.msk [vmem:[#allocation5] sm:$0xff] %vm23_vm0, %v22_v1  ;;  %p65_p8 = scmp.ne.s32.totalorder %s32_s19, %s64_s20  ;;  %p70_p10 = scmp.lt.s32.totalorder %s64_s20, %s64_s20 }
  0x17   :  { %p71_p11 = por %p70_p10, %p69_p9 }
  0x19   :  { %p72_p12 = pnand %p71_p11, %p65_p8 }
  0x1b   :  { %75 = shalt.err (!%p72_p12)
}
  0x1c   :  { %s76_s0 = scalar_lea.hbm %s127_s1, 128 }
  0x1d   :  { %p77_p13 = scmp.ne.s32.totalorder %s127_s1, %s76_s0  ;;  %p80_p0 = scmp.lt.u32.totalorder %s76_s0, %s127_s1 }
  0x1f   :  { %p82_p1 = pnand %p80_p0, %p77_p13 }
  0x21   :  { %85 = shalt.err (!%p82_p1)
}
  0x22   :  { %34 = dma.vmem_to_hbm [thread:$0]  %s32_s19, 128, %s127_s1, [#allocation4]  }
  0x23   :  { %88 = dma.done.wait [#allocation4], 128  }
  0x24   :  { %89 = vsyncadd [#allocation4], 4294967168 }
  0x25   :  { %38 = vsyncpa [#allocation3], 1 }
  0x26   :  { %39 = vsyncpa [#allocation4], 1 }

</bundles_post_ra>
